<compile_context>
chip_gen: v5e
topology: v5e:2x2
jax: 0.10.0
libtpu: 0.0.40
codegen_flags: <defaults>
</compile_context>

<pallas_src>
import functools

import jax
import jax.numpy as jnp
from jax.experimental import pallas as pl
from jax.experimental.pallas import tpu as pltpu


def _round_up(x, m):
    return ((x + m - 1) // m) * m


def _vdc_loss_kernel(db_ref, doff_ref, w_ref, loss_ref, acc_ref, *,
                     v, v_t, inv_denom, need_mask):
    # db_ref   : (3N, 3*C_pad)   bf16   delta pose*alpha coefficients (resident)
    # doff_ref : (3N, 1)         f32    per-(n,i) translation delta   (resident)
    # w_ref    : (1, 3*C_pad, V_t) bf16 streamed basis tile
    # loss_ref : (1, 1)          f32    final loss (written once)
    # acc_ref  : (1, 1)          f32    VMEM scratch partial-sum accumulator
    j = pl.program_id(0)

    @pl.when(j == 0)
    def _init():
        acc_ref[...] = jnp.zeros_like(acc_ref)

    # One MXU matmul per tile gives the vertex difference directly:
    # d[n*3+i, v] = (gt_vertex - vertex)[n, i, v] - doff[n, i]
    d = jnp.dot(db_ref[...], w_ref[0], preferred_element_type=jnp.float32)
    d = d + doff_ref[...]                      # broadcast (3N,1) over lanes

    if need_mask:                              # mask padded vertices (static)
        vidx = j * v_t + jax.lax.broadcasted_iota(jnp.int32, d.shape, 1)
        d = jnp.where(vidx < v, d, 0.0)

    acc_ref[...] += jnp.sum(d * d, keepdims=True)

    @pl.when(j == pl.num_programs(0) - 1)
    def _finalize():
        loss_ref[...] = acc_ref[...] * inv_denom


def prepare_basis(u, w_shp, w_exp, *, max_vt=4096, basis_dtype=jnp.bfloat16):
    """One-time (model-constant) preparation of the streamed basis.

    Returns w_tiled of shape (nt, 3*C_pad, V_t) where row c*C_pad + k holds
    basis k (k == C is the mean shape `u`, k > C is zero padding) of
    coordinate c, and lane v is vertex (tile*V_t + v).
    """
    V = u.shape[0] // 3
    C = w_shp.shape[1] + w_exp.shape[1]
    C_pad = _round_up(C + 1, 128)                       # +1 row for folded-in u
    V_t = min(_round_up(V, 128), max_vt)                # lane-aligned tile
    nt = -(-V // V_t)
    V_pad = nt * V_t

    W = jnp.concatenate([w_shp, w_exp], axis=1).reshape(V, 3, C)   # [v, c, k]
    Wc = jnp.concatenate([W, u.reshape(V, 3, 1)], axis=2)          # (V, 3, C+1)
    Wc = jnp.pad(Wc, ((0, V_pad - V), (0, 0), (0, C_pad - (C + 1))))
    w_tiled = (Wc.reshape(nt, V_t, 3, C_pad)
                 .transpose(0, 2, 3, 1)                 # (nt, 3, C_pad, V_t)
                 .reshape(nt, 3 * C_pad, V_t)
                 .astype(basis_dtype))
    meta = dict(V=V, V_t=V_t, nt=nt, C=C, C_pad=C_pad)
    return w_tiled, meta


def vdc_loss(inp, tgt, param_mean, param_std, w_tiled, meta):
    """Pallas implementation of VDCLoss.forward (opt_style='all')."""
    N = inp.shape[0]
    V, V_t, nt, C, C_pad = (meta[k] for k in ("V", "V_t", "nt", "C", "C_pad"))
    assert inp.shape[1] == 12 + C

    # ---- cheap per-call glue: de-normalize + parse + build delta coeffs ----
    param = inp * param_std + param_mean
    param_g = tgt * param_std + param_mean

    def parse(pm):
        p_ = pm[:, :12].reshape(N, 3, 4)
        return p_[:, :, :3], p_[:, :, 3], pm[:, 12:]

    p, off, alpha = parse(param)
    pg, offg, alphag = parse(param_g)
    off = off.at[:, 2].set(offg[:, 2])          # share gt z-translation

    ones = jnp.ones((N, 1), param.dtype)        # picks up the folded-in u row
    a_ext = jnp.concatenate([alpha, ones], axis=1)      # (N, C+1)
    ag_ext = jnp.concatenate([alphag, ones], axis=1)

    # db[n,i,c,k] = pg[n,i,c]*alphag_ext[n,k] - p[n,i,c]*alpha_ext[n,k]
    db = (pg[:, :, :, None] * ag_ext[:, None, None, :]
          - p[:, :, :, None] * a_ext[:, None, None, :])             # (N,3,3,C+1)
    db = jnp.pad(db, ((0, 0), (0, 0), (0, 0), (0, C_pad - (C + 1))))
    db = db.reshape(3 * N, 3 * C_pad).astype(w_tiled.dtype)

    doff = (offg - off).reshape(3 * N, 1).astype(jnp.float32)

    kc_pad = 3 * C_pad
    need_mask = (nt * V_t != V)
    kernel = functools.partial(
        _vdc_loss_kernel, v=V, v_t=V_t,
        inv_denom=1.0 / (3 * N * V), need_mask=need_mask)

    cost = pl.CostEstimate(
        flops=2 * (3 * N) * kc_pad * (nt * V_t),
        transcendentals=0,
        bytes_accessed=(kc_pad * nt * V_t * w_tiled.dtype.itemsize
                        + (3 * N) * kc_pad * db.dtype.itemsize
                        + (3 * N) * 4 + 4))

    loss = pl.pallas_call(
        kernel,
        out_shape=jax.ShapeDtypeStruct((1, 1), jnp.float32),
        grid_spec=pltpu.PrefetchScalarGridSpec(
            num_scalar_prefetch=0,
            grid=(nt,),
            in_specs=[
                pl.BlockSpec((3 * N, kc_pad), lambda j: (0, 0)),   # resident
                pl.BlockSpec((3 * N, 1), lambda j: (0, 0)),        # resident
                pl.BlockSpec((1, kc_pad, V_t), lambda j: (j, 0, 0)),  # streamed
            ],
            out_specs=pl.BlockSpec((1, 1), lambda j: (0, 0)),
            scratch_shapes=[pltpu.VMEM((1, 1), jnp.float32)],
        ),
        compiler_params=pltpu.CompilerParams(
            dimension_semantics=("arbitrary",),
            vmem_limit_bytes=64 * 1024 * 1024,
        ),
        cost_estimate=cost,
    )(db, doff, w_tiled)
    return loss[0, 0]


def vdc_loss_ref(inp, tgt, param_mean, param_std, u, w_shp, w_exp):
    """Pure-JAX f32 reference mirroring the PyTorch module exactly."""
    N = inp.shape[0]
    param = inp * param_std + param_mean
    param_g = tgt * param_std + param_mean

    def parse(pm):
        p_ = pm[:, :12].reshape(N, 3, 4)
        return p_[:, :, :3], p_[:, :, 3:4], pm[:, 12:211, None], pm[:, 211:, None]

    p, off, ashp, aexp = parse(param)
    pg, offg, ashpg, aexpg = parse(param_g)
    off = off.at[:, 2].set(offg[:, 2])
    u2 = u[:, None]

    def verts(p_, off_, a_s, a_e):
        g = u2[None] + w_shp @ a_s + w_exp @ a_e          # (N, 3V, 1)
        g = g.reshape(N, -1, 3).transpose(0, 2, 1)        # (N, 3, V)
        return p_ @ g + off_

    v = verts(p, off, ashp, aexp)
    vg = verts(pg, offg, ashpg, aexpg)
    return jnp.mean((vg - v) ** 2)


if __name__ == "__main__":
    key = jax.random.PRNGKey(0)
    ks = jax.random.split(key, 7)

    N = 2          # batch
    V = 128        # number of vertices (3V = 384 coordinates)
    n_shp, n_exp = 199, 29
    D = 12 + n_shp + n_exp  # 240-dim parameter vector

    inp = jax.random.normal(ks[0], (N, D), jnp.float32)
    tgt = jax.random.normal(ks[1], (N, D), jnp.float32)
    param_mean = jax.random.normal(ks[2], (D,), jnp.float32) * 0.1
    param_std = jax.random.uniform(ks[3], (D,), jnp.float32, minval=0.5, maxval=1.5)
    u = jax.random.normal(ks[4], (3 * V,), jnp.float32)
    w_shp = jax.random.normal(ks[5], (3 * V, n_shp), jnp.float32) * 0.05
    w_exp = jax.random.normal(ks[6], (3 * V, n_exp), jnp.float32) * 0.05

    # Hoisted, one-time basis preparation (model constants).
    w_tiled, meta = prepare_basis(u, w_shp, w_exp, max_vt=4096,
                                  basis_dtype=jnp.bfloat16)

    loss = vdc_loss(inp, tgt, param_mean, param_std, w_tiled, meta)
    loss = jax.block_until_ready(loss)

    ref = vdc_loss_ref(inp, tgt, param_mean, param_std, u, w_shp, w_exp)
    assert jnp.allclose(loss, ref, rtol=2e-2, atol=1e-3), (loss, ref)

    print("KERNEL_OK")
</pallas_src>

<mosaic_0001>
module attributes {stable_mosaic.version = 11 : i64} {
  func.func @_vdc_loss_kernel(%arg0: i32, %arg1: memref<6x768xbf16, #tpu.memory_space<vmem>>, %arg2: memref<6x1xf32, #tpu.memory_space<vmem>>, %arg3: memref<1x768x128xbf16, #tpu.memory_space<vmem>>, %arg4: memref<1x1xf32, #tpu.memory_space<vmem>>, %arg5: memref<1x1xf32, #tpu.memory_space<vmem>>) attributes {dimension_semantics = [#tpu.dimension_semantics<arbitrary>], iteration_bounds = array<i64: 1>, scalar_prefetch = 0 : i64, scratch_operands = 1 : i64, tpu.core_type = #tpu.core_type<tc>, window_params = [{pipeline_mode = #tpu.pipeline_mode<synchronous>, transform_indices = @transform_0, window_bounds = array<i64: 6, 768>}, {pipeline_mode = #tpu.pipeline_mode<synchronous>, transform_indices = @transform_1, window_bounds = array<i64: 6, 1>}, {transform_indices = @transform_2, window_bounds = array<i64: 1, 768, 128>}, {pipeline_mode = #tpu.pipeline_mode<synchronous>, transform_indices = @transform_3, window_bounds = array<i64: 1, 1>}]} {
    %c0_i32 = arith.constant 0 : i32
    %0 = arith.cmpi eq, %arg0, %c0_i32 : i32
    %1 = arith.extui %0 : i1 to i32
    %c0_i32_0 = arith.constant 0 : i32
    %2 = arith.cmpi ne, %1, %c0_i32_0 : i32
    scf.if %2 {
      %cst_14 = arith.constant 0.000000e+00 : f32
      %22 = vector.broadcast %cst_14 : f32 to vector<1x1xf32>
      %c0_15 = arith.constant 0 : index
      %c0_16 = arith.constant 0 : index
      %23 = vector.load %arg5[%c0_15, %c0_16] : memref<1x1xf32, #tpu.memory_space<vmem>>, vector<1x1xf32>
      tpu.vector_store %arg5[%c0_15, %c0_16], %22 {strides = array<i32>} : memref<1x1xf32, #tpu.memory_space<vmem>>, vector<1x1xf32>,
    } else {
    }
    %c0 = arith.constant 0 : index
    %c0_1 = arith.constant 0 : index
    %3 = vector.load %arg1[%c0, %c0_1] : memref<6x768xbf16, #tpu.memory_space<vmem>>, vector<6x768xbf16>
    %c0_2 = arith.constant 0 : index
    %c0_3 = arith.constant 0 : index
    %c0_4 = arith.constant 0 : index
    %4 = vector.load %arg3[%c0_2, %c0_3, %c0_4] : memref<1x768x128xbf16, #tpu.memory_space<vmem>>, vector<1x768x128xbf16>
    %5 = vector.shape_cast %4 : vector<1x768x128xbf16> to vector<768x128xbf16>
    %cst = arith.constant dense<0.000000e+00> : vector<6x128xf32>
    %6 = tpu.matmul %3, %5, %cst {dimension_numbers = #tpu.dot_dimension_numbers<[1], [0], [0], [1], [0, 0, 1, 1], [], []>} : vector<6x768xbf16>, vector<768x128xbf16>, vector<6x128xf32> -> vector<6x128xf32>
    %c0_5 = arith.constant 0 : index
    %c0_6 = arith.constant 0 : index
    %7 = vector.load %arg2[%c0_5, %c0_6] : memref<6x1xf32, #tpu.memory_space<vmem>>, vector<6x1xf32>
    %8 = vector.broadcast %7 : vector<6x1xf32> to vector<6x128xf32>
    %9 = arith.addf %6, %8 : vector<6x128xf32>
    %c0_7 = arith.constant 0 : index
    %c0_8 = arith.constant 0 : index
    %10 = vector.load %arg5[%c0_7, %c0_8] : memref<1x1xf32, #tpu.memory_space<vmem>>, vector<1x1xf32>
    %11 = arith.mulf %9, %9 : vector<6x128xf32>
    %12 = vector.shape_cast %11 : vector<6x128xf32> to vector<1x6x128xf32>
    %cst_9 = arith.constant dense<0.000000e+00> : vector<1xf32>
    %13 = vector.multi_reduction <add>, %12, %cst_9 [1, 2] : vector<1x6x128xf32> to vector<1xf32>
    %14 = vector.shape_cast %13 : vector<1xf32> to vector<1x1x1xf32>
    %15 = vector.extract %14[0, 0, 0] : f32 from vector<1x1x1xf32>
    %16 = vector.broadcast %15 : f32 to vector<1x1xf32>
    %17 = arith.addf %10, %16 : vector<1x1xf32>
    %c0_10 = arith.constant 0 : index
    %c0_11 = arith.constant 0 : index
    %18 = vector.load %arg5[%c0_10, %c0_11] : memref<1x1xf32, #tpu.memory_space<vmem>>, vector<1x1xf32>
    tpu.vector_store %arg5[%c0_10, %c0_11], %17 {strides = array<i32>} : memref<1x1xf32, #tpu.memory_space<vmem>>, vector<1x1xf32>,
    %c0_i32_12 = arith.constant 0 : i32
    %19 = arith.cmpi eq, %arg0, %c0_i32_12 : i32
    %20 = arith.extui %19 : i1 to i32
    %c0_i32_13 = arith.constant 0 : i32
    %21 = arith.cmpi ne, %20, %c0_i32_13 : i32
    scf.if %21 {
      %c0_14 = arith.constant 0 : index
      %c0_15 = arith.constant 0 : index
      %22 = vector.load %arg5[%c0_14, %c0_15] : memref<1x1xf32, #tpu.memory_space<vmem>>, vector<1x1xf32>
      %cst_16 = arith.constant 0.00130208337 : f32
      %23 = vector.broadcast %cst_16 : f32 to vector<1x1xf32>
      %24 = arith.mulf %22, %23 : vector<1x1xf32>
      %c0_17 = arith.constant 0 : index
      %c0_18 = arith.constant 0 : index
      %25 = vector.load %arg4[%c0_17, %c0_18] : memref<1x1xf32, #tpu.memory_space<vmem>>, vector<1x1xf32>
      tpu.vector_store %arg4[%c0_17, %c0_18], %24 {strides = array<i32>} : memref<1x1xf32, #tpu.memory_space<vmem>>, vector<1x1xf32>,
    } else {
    }
    return
  }
  func.func @transform_0(%arg0: i32) -> (i32, i32) {
    %c0_i32 = arith.constant 0 : i32
    %c0_i32_0 = arith.constant 0 : i32
    %c0_i32_1 = arith.constant 0 : i32
    return %c0_i32, %c0_i32_0 : i32, i32
  }
  func.func @transform_1(%arg0: i32) -> (i32, i32) {
    %c0_i32 = arith.constant 0 : i32
    %c0_i32_0 = arith.constant 0 : i32
    %c0_i32_1 = arith.constant 0 : i32
    return %c0_i32, %c0_i32_0 : i32, i32
  }
  func.func @transform_2(%arg0: i32) -> (i32, i32, i32) {
    %c0_i32 = arith.constant 0 : i32
    %c0_i32_0 = arith.constant 0 : i32
    %c0_i32_1 = arith.constant 0 : i32
    return %arg0, %c0_i32, %c0_i32_0 : i32, i32, i32
  }
  func.func @transform_3(%arg0: i32) -> (i32, i32) {
    %c0_i32 = arith.constant 0 : i32
    %c0_i32_0 = arith.constant 0 : i32
    %c0_i32_1 = arith.constant 0 : i32
    return %c0_i32, %c0_i32_0 : i32, i32
  }
}

</mosaic_0001>

<bundles_post_ra>
// kernel: tpu_custom_call.1
= control target key start
LH: loop header
LB: loop body
LE: loop exit
PB: predicated region body
PF: predicated region fallthrough
CT: control target
= control target key end

     0   :  { %8 = vsyncpa [#allocation4], 0  ;;  %s954_s0 = inlined_call_operand.hbm [shape: bf16[6,768], index: 0, kind: input, shape index: {}]   ;;  %s955_s1 = inlined_call_operand.vmem [shape: f32[6,1], index: 1, kind: input, shape index: {}]   ;;  %s956_s2 = inlined_call_operand.hbm [shape: bf16[1,768,128], index: 2, kind: input, shape index: {}]   ;;  %s957_s3 = inlined_call_operand.hbm [shape: f32[1,1], index: 3, kind: output, shape index: {}]  }
   0x1   :  { %9 = vsyncpa [#allocation7], 0 }
   0x2   :  { %10 = vsyncpa [#allocation5], 0  ;;  %s16_s14 = sshll.u32 %s954_s0, 4  ;;  %s912_s15 = smov [#allocation3]   ;;  %s17_s14 = int_to_ptr.hbm [resolvable:$true] %s16_s14 }
   0x3   :  { %s18_s16 = sshll.u32 %s912_s15, 4  ;;  %s28_s19 = sshll.u32 %s956_s2, 4  ;;  %s19_s16 = int_to_ptr.vmem [resolvable:$true] %s18_s16  ;;  %s29_s19 = int_to_ptr.hbm [resolvable:$true] %s28_s19 }
   0x4   :  { %21 = dma.hbm_to_vmem [thread:$0]  %s17_s14, 384, %s19_s16, [#allocation4]  }
   0x5   :  { %s913_s20 = smov [#allocation6]   ;;  %s914_s22 = smov 64  }
   0x6   :  { %s30_s21 = sshll.u32 %s913_s20, 4  ;;  %s915_s23 = smov 4   ;;  %s31_s21 = int_to_ptr.vmem [resolvable:$true] %s30_s21 }
   0x7   :  { %36 = dma.hbm_to_vmem [thread:$0]  %s29_s19, 6144, %s31_s21, [#allocation7], %s914_s22, %s914_s22, %s915_s23  }
   0x8   :  { %906 = dma.done.wait [#allocation4], 384  }
   0x9   :  { %907 = vsyncadd [#allocation4], 4294966912 }
   0xa   :  { %908 = dma.done.wait [#allocation7], 6144  }
   0xb   :  { %909 = vsyncadd [#allocation7], 4294961152  ;;  %v783_v0 = vld [vmem:[#allocation6 + $0x38] sm:$0xff]  ;;  %v782_v2 = vld [vmem:[#allocation6 + $0x30] sm:$0xff]  ;;  %v916_v29 = vmov 0   ;;  %vm545_vm0 = vcmask 1045504  }
   0xc   :  { %v791_v1 = vld [vmem:[#allocation6 + $0x78] sm:$0xff]  ;;  %465 = vmatpush.bf16.msra.mxu0 %v783_v0  ;;  %v790_v3 = vld [vmem:[#allocation6 + $0x70] sm:$0xff]  ;;  %v781_v8 = vld [vmem:[#allocation6 + $0x28] sm:$0xff]  ;;  %833 = vset.pattern.permute.xlu0 %v916_v29  ;;  %vm49_vm1 = vcmask 0   ;;  %s918_s24 = smov [#allocation8]   ;;  %s573_s28 = sshll.u32 %s957_s3, 4  ;;  %s574_s28 = int_to_ptr.hbm [resolvable:$true] %s573_s28 }
   0xd   :  { %478 = vmatpush.bf16.msra.mxu1 %v791_v1  ;;  %v799_v4 = vld [vmem:[#allocation6 + $0xb8] sm:$0xff]  ;;  %v798_v6 = vld [vmem:[#allocation6 + $0xb0] sm:$0xff]  ;;  %v789_v9 = vld [vmem:[#allocation6 + $0x68] sm:$0xff]  ;;  %s571_s25 = sshll.u32 %s918_s24, 4  ;;  %s572_s25 = int_to_ptr.vmem [resolvable:$true] %s571_s25 }
   0xe   :  { %v807_v5 = vld [vmem:[#allocation6 + $0xf8] sm:$0xff]  ;;  %491 = vmatpush.bf16.msra.mxu2 %v799_v4  ;;  %v806_v7 = vld [vmem:[#allocation6 + $0xf0] sm:$0xff]  ;;  %v797_v10 = vld [vmem:[#allocation6 + $0xa8] sm:$0xff] }
   0xf   :  { %504 = vmatpush.bf16.msra.mxu3 %v807_v5  ;;  %v805_v11 = vld [vmem:[#allocation6 + $0xe8] sm:$0xff]  ;;  %v780_v12 = vld [vmem:[#allocation6 + $0x20] sm:$0xff]  ;;  %v779_v16 = vld [vmem:[#allocation6 + $0x18] sm:$0xff] }
  0x10   :  { %466 = vmatpush.bf16.msra.mxu0 %v782_v2  ;;  %v788_v13 = vld [vmem:[#allocation6 + $0x60] sm:$0xff]  ;;  %v787_v17 = vld [vmem:[#allocation6 + $0x58] sm:$0xff]  ;;  %v778_v20 = vld [vmem:[#allocation6 + $0x10] sm:$0xff] }
  0x11   :  { %479 = vmatpush.bf16.msra.mxu1 %v790_v3  ;;  %v796_v14 = vld [vmem:[#allocation6 + $0xa0] sm:$0xff]  ;;  %v795_v18 = vld [vmem:[#allocation6 + $0x98] sm:$0xff]  ;;  %v786_v21 = vld [vmem:[#allocation6 + $0x50] sm:$0xff] }
  0x12   :  { %492 = vmatpush.bf16.msra.mxu2 %v798_v6  ;;  %v804_v15 = vld [vmem:[#allocation6 + $0xe0] sm:$0xff]  ;;  %v803_v19 = vld [vmem:[#allocation6 + $0xd8] sm:$0xff]  ;;  %v794_v22 = vld [vmem:[#allocation6 + $0x90] sm:$0xff] }
  0x13   :  { %505 = vmatpush.bf16.msra.mxu3 %v806_v7  ;;  %v802_v23 = vld [vmem:[#allocation6 + $0xd0] sm:$0xff]  ;;  %v777_v24 = vld [vmem:[#allocation6 + $0x8] sm:$0xff]  ;;  %v776_v34 = vld [vmem:[#allocation6] sm:$0xff] }
  0x14   :  { %467 = vmatpush.bf16.msra.mxu0 %v781_v8  ;;  %v785_v25 = vld [vmem:[#allocation6 + $0x48] sm:$0xff]  ;;  %v52_v33 = vld [vmem:[#allocation3 + $0x8] sm:$0x77]  ;;  %v784_v35 = vld [vmem:[#allocation6 + $0x40] sm:$0xff] }
  0x15   :  { %480 = vmatpush.bf16.msra.mxu1 %v789_v9  ;;  %v51_v26 = vld [vmem:[#allocation3] sm:$0x77]  ;;  %v815_v36 = vld [vmem:[#allocation6 + $0x138] sm:$0xff]  ;;  %v792_v38 = vld [vmem:[#allocation6 + $0x80] sm:$0xff]  ;;  %v161_v39 = vunpack.c.l.b16 %v52_v33  ;;  %v162_v42 = vunpack.c.h.b16 %v52_v33 }
  0x16   :  { %493 = vmatpush.bf16.msra.mxu2 %v797_v10  ;;  %v150_v27 = vld [vmem:[%s955_s1] sm:$0x3f]  ;;  %v159_v30 = vunpack.c.l.b16 %v51_v26  ;;  %v160_v32 = vunpack.c.h.b16 %v51_v26  ;;  %v823_v37 = vld [vmem:[#allocation6 + $0x178] sm:$0xff]  ;;  %v814_v44 = vld [vmem:[#allocation6 + $0x130] sm:$0xff] }
  0x17   :  { %506 = vmatpush.bf16.msra.mxu3 %v805_v11  ;;  %v793_v28 = vld [vmem:[#allocation6 + $0x88] sm:$0xff]  ;;  %153 = vperm.xlu0 %833, %v150_v27   ;;  %v800_v43 = vld [vmem:[#allocation6 + $0xc0] sm:$0xff]  ;;  %v822_v45 = vld [vmem:[#allocation6 + $0x170] sm:$0xff]  ;;  %v167_v46 = vpack.c.b16 %v161_v39, %v161_v39  ;;  %v168_v47 = vpack.c.b16 %v162_v42, %v162_v42 }
  0x18   :  { %468 = vmatpush.bf16.msra.mxu0 %v780_v12  ;;  %v801_v31 = vld [vmem:[#allocation6 + $0xc8] sm:$0xff]  ;;  %v165_v40 = vpack.c.b16 %v159_v30, %v159_v30  ;;  %v166_v41 = vpack.c.b16 %v160_v32, %v160_v32  ;;  %v812_v50 = vld [vmem:[#allocation6 + $0x120] sm:$0xff]  ;;  %v811_v52 = vld [vmem:[#allocation6 + $0x118] sm:$0xff] }
  0x19   :  { %481 = vmatpush.bf16.msra.mxu1 %v788_v13  ;;  %v813_v48 = vld [vmem:[#allocation6 + $0x128] sm:$0xff]  ;;  %v820_v51 = vld [vmem:[#allocation6 + $0x160] sm:$0xff]  ;;  %v819_v53 = vld [vmem:[#allocation6 + $0x158] sm:$0xff] }
  0x1a   :  { %494 = vmatpush.bf16.msra.mxu2 %v796_v14  ;;  %v821_v49 = vld [vmem:[#allocation6 + $0x168] sm:$0xff]  ;;  %v810_v54 = vld [vmem:[#allocation6 + $0x110] sm:$0xff]  ;;  %v53_v58 = vld [vmem:[#allocation3 + $0x10] sm:$0x77] }
  0x1b   :  { %507 = vmatpush.bf16.msra.mxu3 %v804_v15  ;;  %v818_v55 = vld [vmem:[#allocation6 + $0x150] sm:$0xff]  ;;  %v809_v56 = vld [vmem:[#allocation6 + $0x108] sm:$0xff]  ;;  %v163_v59 = vunpack.c.l.b16 %v53_v58  ;;  %v164_v60 = vunpack.c.h.b16 %v53_v58  ;;  %v808_v61 = vld [vmem:[#allocation6 + $0x100] sm:$0xff] }
  0x1c   :  { %469 = vmatpush.bf16.msra.mxu0 %v779_v16  ;;  %v817_v57 = vld [vmem:[#allocation6 + $0x148] sm:$0xff]  ;;  %v816_v62 = vld [vmem:[#allocation6 + $0x140] sm:$0xff] }
  0x1d   :  { %482 = vmatpush.bf16.msra.mxu1 %v787_v17  ;;  %v169_v63 = vpack.c.b16 %v163_v59, %v163_v59  ;;  %v170_v0 = vpack.c.b16 %v164_v60, %v164_v60 }
  0x1e   :  { %495 = vmatpush.bf16.msra.mxu2 %v795_v18 }
  0x1f   :  { %508 = vmatpush.bf16.msra.mxu3 %v803_v19 }
  0x20   :  { %470 = vmatpush.bf16.msra.mxu0 %v778_v20 }
  0x21   :  { %483 = vmatpush.bf16.msra.mxu1 %v786_v21 }
  0x22   :  { %496 = vmatpush.bf16.msra.mxu2 %v794_v22  ;;  %v917_v22 = vmov 0.0  }
  0x23   :  { %509 = vmatpush.bf16.msra.mxu3 %v802_v23  ;;  %50 = vst.msk [vmem:[#allocation2] sm:$0x1] %vm49_vm1, %v917_v22 }
  0x24   :  { %471 = vmatpush.bf16.msra.mxu0 %v777_v24 }
  0x25   :  { %484 = vmatpush.bf16.msra.mxu1 %v785_v25 }
  0x26   :  { %497 = vmatpush.bf16.msra.mxu2 %v793_v28 }
  0x27   :  { %510 = vmatpush.bf16.msra.mxu3 %v801_v31 }
  0x28   :  { %472 = vmatpush.bf16.msra.mxu0 %v776_v34 }
  0x29   :  { %485 = vmatpush.bf16.msra.mxu1 %v784_v35 }
  0x2a   :  { %498 = vmatpush.bf16.msra.mxu2 %v792_v38  ;;  %v543_v30 = vld [vmem:[#allocation2] sm:$0x1] }
  0x2b   :  { %473 = vmatmul.bf16.vlgmr.msra.gmra.mxu0 %v165_v40  ;;  %511 = vmatpush.bf16.msra.mxu3 %v800_v43 }
  0x2c   :  { %517 = vmatpush.bf16.msrb.mxu0 %v815_v36  ;;  %486 = vmatmul.bf16.vlgmr.msra.gmra.mxu1 %v166_v41 }
  0x2d   :  { %530 = vmatpush.bf16.msrb.mxu1 %v823_v37  ;;  %499 = vmatmul.bf16.vlgmr.msra.gmra.mxu2 %v167_v46 }
  0x2e   :  { %512 = vmatmul.bf16.vlgmr.msra.gmra.mxu3 %v168_v47 }
  0x30   :  { %518 = vmatpush.bf16.msrb.mxu0 %v814_v44 }
  0x31   :  { %531 = vmatpush.bf16.msrb.mxu1 %v822_v45 }
  0x34   :  { %519 = vmatpush.bf16.msrb.mxu0 %v813_v48 }
  0x35   :  { %532 = vmatpush.bf16.msrb.mxu1 %v821_v49 }
  0x38   :  { %520 = vmatpush.bf16.msrb.mxu0 %v812_v50 }
  0x39   :  { %533 = vmatpush.bf16.msrb.mxu1 %v820_v51 }
  0x3c   :  { %521 = vmatpush.bf16.msrb.mxu0 %v811_v52 }
  0x3d   :  { %534 = vmatpush.bf16.msrb.mxu1 %v819_v53 }
  0x40   :  { %522 = vmatpush.bf16.msrb.mxu0 %v810_v54 }
  0x41   :  { %535 = vmatpush.bf16.msrb.mxu1 %v818_v55 }
  0x44   :  { %523 = vmatpush.bf16.msrb.mxu0 %v809_v56 }
  0x45   :  { %536 = vmatpush.bf16.msrb.mxu1 %v817_v57 }
  0x48   :  { %524 = vmatpush.bf16.msrb.mxu0 %v808_v61 }
  0x49   :  { %537 = vmatpush.bf16.msrb.mxu1 %v816_v62 }
  0x4b   :  { %525 = vmatmul.bf16.vlgmr.msrb.gmra.mxu0 %v169_v63 }
  0x4c   :  { %538 = vmatmul.bf16.vlgmr.msrb.gmra.mxu1 %v170_v0 }
  0x89   :  { %v154_v7 = vpop.permute.xlu0 %153 }
  0xa8   :  { %v474_v1 = vpop.f32.mrf.mxu0 }
  0xa9   :  { %v487_v2 = vpop.f32.mrf.mxu1  ;;  %v475_v8 = vadd.f32 %v474_v1, %v154_v7 }
  0xab   :  { %v488_v11 = vadd.f32 %v487_v2, %v475_v8 }
  0xb0   :  { %v476_v3 = vpop.f32.mrf.mxu0  ;;  %v500_v5 = vpop.f32.mrf.mxu2 }
  0xb1   :  { %v489_v4 = vpop.f32.mrf.mxu1  ;;  %v513_v6 = vpop.f32.mrf.mxu3  ;;  %v501_v12 = vadd.f32 %v500_v5, %v488_v11 }
  0xb3   :  { %v514_v13 = vadd.f32 %v513_v6, %v501_v12 }
  0xb8   :  { %v502_v9 = vpop.f32.mrf.mxu2 }
  0xb9   :  { %v515_v10 = vpop.f32.mrf.mxu3 }
  0xc8   :  { %v526_v14 = vpop.f32.mrf.mxu0 }
  0xc9   :  { %v539_v15 = vpop.f32.mrf.mxu1  ;;  %v527_v16 = vadd.f32 %v526_v14, %v514_v13 }
  0xcb   :  { %v540_v17 = vadd.f32 %v539_v15, %v527_v16 }
  0xcd   :  { %v544_v18 = vmul.f32 %v540_v17, %v540_v17 }
  0xcf   :  { %v546_v19 = vsel %vm545_vm0, %v544_v18, 0.0 }
  0xd0   :  { %v528_v20 = vpop.f32.mrf.mxu0  ;;  %547 = vadd.xlane.f32.xlu0 %v546_v19 }
  0xd1   :  { %v541_v21 = vpop.f32.mrf.mxu1 }
 0x143   :  { %v548_v23 = vpop.xlane.xlu0 %547 }
 0x144   :  { %v549_v24 = vrot.slane %v548_v23, 4 }
 0x146   :  { %v550_v25 = vadd.f32 %v549_v24, %v548_v23 }
 0x148   :  { %v551_v26 = vrot.slane %v550_v25, 2 }
 0x14a   :  { %v552_v27 = vadd.f32 %v551_v26, %v550_v25 }
 0x14c   :  { %v553_v28 = vrot.slane %v552_v27, 1 }
 0x14e   :  { %v554_v29 = vadd.f32 %v553_v28, %v552_v27 }
 0x150   :  { %824 = vpush %v554_v29 }
 0x181   :  { %s825_s1 = spop %824 }
 0x182   :  { %v556_v31 = vstv %s825_s1 }
 0x183   :  { %v557_v32 = vadd.f32 %v556_v31, %v543_v30 }
 0x185   :  { %559 = vst.msk [vmem:[#allocation2] sm:$0x1] %vm49_vm1, %v557_v32 }
 0x18c   :  { %v563_v33 = vld [vmem:[#allocation2] sm:$0x1] }
 0x18d   :  { %v564_v34 = vmul.f32 0.0013020834, %v563_v33 }
 0x18f   :  { %565 = vst.msk [vmem:[#allocation8] sm:$0x1] %vm49_vm1, %v564_v34 }
 0x190   :  { %576 = dma.vmem_to_hbm [thread:$0]  %s572_s25, 16, %s574_s28, [#allocation5]  }
 0x191   :  { %910 = dma.done.wait [#allocation5], 16  }
 0x192   :  { %911 = vsyncadd [#allocation5], 4294967280 }
 0x193   :  { %581 = vsyncpa [#allocation4], 1 }
 0x194   :  { %582 = vsyncpa [#allocation7], 1 }
 0x195   :  { %583 = vsyncpa [#allocation5], 1 }

</bundles_post_ra>
